<compile_context>
chip_gen: v7x
topology: tpu7x:2x2x1
jax: 0.10.0
libtpu: 0.0.40
codegen_flags: <defaults>
</compile_context>

<pallas_src>
import jax
import jax.numpy as jnp
from jax.experimental import pallas as pl
from jax.experimental.pallas import tpu as pltpu


def _softmax_kernel(x_ref, o_ref):
    # x_ref / o_ref: (TILE_ROWS, VOCAB) in VMEM.
    # Compute in f32 (v5e VPU/EUP have no bf16 path); numerically stable.
    x = x_ref[...].astype(jnp.float32)
    m = jnp.max(x, axis=-1, keepdims=True)
    e = jnp.exp(x - m)
    s = jnp.sum(e, axis=-1, keepdims=True)
    # Exact division: denominator is one value per row, so an approx
    # reciprocal saves nothing and only adds normalization error.
    o_ref[...] = (e / s).astype(o_ref.dtype)


def _plan_tiles(rows, vocab, dtype):
    """Pick (tile_rows, vmem_limit_bytes) for the row-tiled softmax."""
    itemsize = jnp.dtype(dtype).itemsize
    # Sublane packing of the I/O dtype: 8 rows for 32-bit, 16 for 16-bit, 32
    # for 8-bit elements.
    pack = 8 * max(1, 4 // max(itemsize, 1))

    # Per-generation VMEM capacity (v5e/v6e 128 MiB, v7x 64 MiB).
    try:
        vmem_cap = int(pltpu.get_tpu_info().vmem_capacity_bytes)
    except Exception:  # interpret mode / CPU emulation
        vmem_cap = 64 * 1024 * 1024

    # Budget for pipelined blocks + in-kernel f32 temps: ~60% of physical
    # VMEM, never more than 40 MiB (comfortable on every generation).
    budget = min((vmem_cap * 3) // 5, 40 * 1024 * 1024)

    # Per-row VMEM bytes: in+out blocks, double-buffered, in the I/O dtype,
    # plus ~2 block-sized f32 temporaries (the f32 cast of x and exp result).
    bytes_per_row = vocab * (itemsize * 2 * 2 + 4 * 2)
    t = max(budget // max(bytes_per_row, 1), 1)

    # Keep each I/O block at <= ~8 MiB: big enough to amortize the ~0.35 us
    # per-step overhead even against v7x's 3.2 TB/s HBM, small enough for
    # well-behaved DMA chunks.
    t = min(t, max((8 * 1024 * 1024) // max(vocab * itemsize, 1), 1))

    # Sublane alignment and "don't tile past the data".
    t = max((t // pack) * pack, pack)
    rows_pad = -(-rows // pack) * pack
    t = min(t, rows_pad)

    # Prefer >= 2 grid steps along the 'parallel' row axis so v7x's two
    # TensorCores both get work (no measurable cost on v5e/v6e).
    if rows_pad > pack and t >= rows_pad:
        half = -(-(rows_pad // 2) // pack) * pack
        t = max(min(t, half), pack)

    # Scoped-VMEM limit: enough for the chosen blocks + headroom, capped well
    # under physical capacity on every generation.
    needed = t * bytes_per_row + 8 * 1024 * 1024
    vmem_limit = int(min(max(needed, 32 * 1024 * 1024), (vmem_cap * 3) // 4))
    return int(t), vmem_limit


def softmax_last_dim(x):
    """Row-wise softmax over the last axis via a Pallas TPU kernel."""
    orig_shape = x.shape
    vocab = int(orig_shape[-1])
    rows = 1
    for d in orig_shape[:-1]:
        rows *= int(d)
    x2 = x.reshape(rows, vocab)

    tile_rows, vmem_limit = _plan_tiles(rows, vocab, x.dtype)
    grid = (pl.cdiv(rows, tile_rows),)  # ragged last block is row-independent

    out = pl.pallas_call(
        _softmax_kernel,
        out_shape=jax.ShapeDtypeStruct((rows, vocab), x.dtype),
        grid_spec=pltpu.PrefetchScalarGridSpec(
            num_scalar_prefetch=0,
            grid=grid,
            in_specs=[pl.BlockSpec((tile_rows, vocab), lambda i: (i, 0))],
            out_specs=pl.BlockSpec((tile_rows, vocab), lambda i: (i, 0)),
        ),
        compiler_params=pltpu.CompilerParams(
            dimension_semantics=("parallel",),
            vmem_limit_bytes=vmem_limit,
        ),
    )(x2)

    return out.reshape(orig_shape)


class CopyMechanism:
    """JAX/Pallas port of the PyTorch CopyMechanism module."""

    def __init__(self, encoder_hidden_size, decoder_hidden_size,
                 decoder_input_size, key=jax.random.PRNGKey(0)):
        in_features = (encoder_hidden_size + 3 * decoder_hidden_size
                       + decoder_input_size)
        k_w, k_b = jax.random.split(key)
        bound = 1.0 / jnp.sqrt(in_features)
        # pgen Linear(in_features, 1) parameters — deterministic init,
        # unused by forward() (matches the PyTorch module semantics).
        self.pgen_weight = jax.random.uniform(
            k_w, (1, in_features), minval=-bound, maxval=bound,
            dtype=jnp.float32)
        self.pgen_bias = jax.random.uniform(
            k_b, (1,), minval=-bound, maxval=bound, dtype=jnp.float32)

    def __call__(self, output_logits, attn_weights, decoder_hidden_state,
                 decoder_input, context_vector, encoder_input):
        # forward() only returns softmax(output_logits, dim=-1).
        return softmax_last_dim(output_logits)


if __name__ == "__main__":
    key = jax.random.PRNGKey(0)
    k1, k2, k3, k4, k5, k6, k7 = jax.random.split(key, 7)

    batch, seq = 2, 8
    vocab = 128
    enc_h, dec_h, dec_in = 32, 32, 16
    src_len = 16

    output_logits = jax.random.normal(k1, (batch, seq, vocab), jnp.float32)
    attn_weights = jax.random.normal(k2, (batch, seq, src_len), jnp.float32)
    decoder_hidden_state = jax.random.normal(k3, (batch, seq, 3 * dec_h),
                                             jnp.float32)
    decoder_input = jax.random.normal(k4, (batch, seq, dec_in), jnp.float32)
    context_vector = jax.random.normal(k5, (batch, seq, enc_h), jnp.float32)
    encoder_input = jax.random.randint(k6, (batch, src_len), 0, vocab)

    model = CopyMechanism(enc_h, dec_h, dec_in, key=k7)
    out = model(output_logits, attn_weights, decoder_hidden_state,
                decoder_input, context_vector, encoder_input)
    out = jax.block_until_ready(out)

    # Sanity check vs plain-JAX reference.
    ref = jax.nn.softmax(output_logits, axis=-1)
    assert out.shape == output_logits.shape
    assert jnp.allclose(out, ref, atol=1e-5, rtol=1e-5)

    print("KERNEL_OK")
</pallas_src>

<mosaic_0001>
module attributes {stable_mosaic.version = 11 : i64} {
  func.func @_softmax_kernel(%arg0: i32, %arg1: memref<8x128xf32, #tpu.memory_space<vmem>>, %arg2: memref<8x128xf32, #tpu.memory_space<vmem>>) attributes {dimension_semantics = [#tpu.dimension_semantics<parallel>], iteration_bounds = array<i64: 2>, scalar_prefetch = 0 : i64, scratch_operands = 0 : i64, tpu.core_type = #tpu.core_type<tc>, window_params = [{transform_indices = @transform_0, window_bounds = array<i64: 8, 128>}, {transform_indices = @transform_1, window_bounds = array<i64: 8, 128>}]} {
    %c0 = arith.constant 0 : index
    %c0_0 = arith.constant 0 : index
    %0 = vector.load %arg1[%c0, %c0_0] : memref<8x128xf32, #tpu.memory_space<vmem>>, vector<8x128xf32>
    %cst = arith.constant dense<0xFF800000> : vector<8xf32>
    %1 = vector.multi_reduction <maximumf>, %0, %cst [1] : vector<8x128xf32> to vector<8xf32>
    %2 = vector.shape_cast %1 : vector<8xf32> to vector<8x1xf32>
    %3 = vector.broadcast %2 : vector<8x1xf32> to vector<8x128xf32>
    %4 = arith.subf %0, %3 : vector<8x128xf32>
    %5 = math.exp %4 : vector<8x128xf32>
    %cst_1 = arith.constant dense<0.000000e+00> : vector<8xf32>
    %6 = vector.multi_reduction <add>, %5, %cst_1 [1] : vector<8x128xf32> to vector<8xf32>
    %7 = vector.shape_cast %6 : vector<8xf32> to vector<8x1xf32>
    %8 = vector.broadcast %7 : vector<8x1xf32> to vector<8x128xf32>
    %9 = arith.divf %5, %8 : vector<8x128xf32>
    %c0_2 = arith.constant 0 : index
    %c0_3 = arith.constant 0 : index
    %10 = vector.load %arg2[%c0_2, %c0_3] : memref<8x128xf32, #tpu.memory_space<vmem>>, vector<8x128xf32>
    tpu.vector_store %arg2[%c0_2, %c0_3], %9 {strides = array<i32>} : memref<8x128xf32, #tpu.memory_space<vmem>>, vector<8x128xf32>,
    return
  }
  func.func @transform_0(%arg0: i32) -> (i32, i32) {
    %c0_i32 = arith.constant 0 : i32
    %c0_i32_0 = arith.constant 0 : i32
    return %arg0, %c0_i32 : i32, i32
  }
  func.func @transform_1(%arg0: i32) -> (i32, i32) {
    %c0_i32 = arith.constant 0 : i32
    %c0_i32_0 = arith.constant 0 : i32
    return %arg0, %c0_i32 : i32, i32
  }
}

</mosaic_0001>

<bundles_post_ra>
// kernel: tpu_custom_call.1
= control target key start
LH: loop header
LB: loop body
LE: loop exit
PB: predicated region body
PF: predicated region fallthrough
CT: control target
= control target key end

     0   :  { %6 = vsyncpa [#allocation3], 0  ;;  %s560_s0 = inlined_call_operand.hbm [shape: f32[16,128], index: 0, kind: input, shape index: {}]   ;;  %s561_s1 = inlined_call_operand.hbm [shape: f32[16,128], index: 1, kind: output, shape index: {}]  }
   0x1   :  { %8 = vsyncpa [#allocation3 + $0x1], 0 }
   0x2   :  { %9 = vsyncpa [#allocation4], 0 }
   0x3   :  { %11 = vsyncpa [#allocation4 + $0x1], 0  ;;  %s399_s6 = smov 0   ;;  %s401_s7 = smov 0  }
   0x4   :  { %s403_s8 = smov 0   ;;  %s405_s9 = smov 0  }
   0x5 LB: > { %s420_s10 = sadd.s32 4294967295, %s385_s9   ;;  %s227_s11 = sadd.s32 4294967294, %s385_s9   ;;  %s385_s9 = sphi %s405_s9, %s576_s9   ;;  %s381_s8 = sphi %s403_s8, %s575_s8   ;;  %s377_s7 = sphi %s401_s7, %s574_s7   ;;  %s373_s6 = sphi %s399_s6, %s573_s6  }
   0x6   : > { %s424_s12 = sadd.s32 1, %s385_s9   ;;  %s24_s13 = sadd.s32 1, %s381_s8 }
   0x7   : > { %s21_s14 = ssub.s32 %s385_s9, %s424_s12  ;;  %p31_p0 = scmp.ne.s32.totalorder %s381_s8, %s377_s7 }
   0x8   : > { %p22_p1 = scmp.eq.s32.totalorder %s21_s14, 0  ;;  %p32_p2 = scmp.eq.s32.totalorder %s385_s9, 0 }
   0x9   : > { %p37_p3 = scmp.ne.s32.totalorder %s377_s7, %s373_s6  ;;  %p38_p4 = scmp.eq.s32.totalorder %s420_s10, 0 }
   0xa   : > { %s436_s15 = scalar_select %p22_p1, %s381_s8, %s24_s13  }
   0xb   : > { %p438_p5 = por %p32_p2, %p31_p0  ;;  %p442_p6 = por %p38_p4, %p37_p3 }
   0xc   : > { %p61_p7 = scmp.eq.s32.totalorder %s420_s10, 1  ;;  %p67_p8 = scmp.eq.s32.totalorder %s227_s11, 1 }
   0xd   : > { %p251_p10 = scmp.lt.s32.totalorder %s385_s9, 2  ;;  %s87_s20 = sand.u32 1, %s381_s8  }
   0xe   : > { %p449_p11 = por %p61_p7, %p31_p0  ;;  %p453_p12 = por %p67_p8, %p37_p3 }
   0xf   : > { %s231_s21 = sshll.u32 %s385_s9, 7  ;;  %s230_s22 = sshll.u32 %s87_s20, 3 }
  0x10   : > { %s565_s18 = scalar_select %p449_p11, 1, 0 }
  0x11   : > { %s566_s19 = scalar_select %p453_p12, 1, 0 }
  0x12   : > { %s462_s25 = scalar_lea.hbm %s560_s0, %s231_s21  ;;  %s91_s26 = scalar_lea.vmem [#allocation2], %s230_s22 }
  0x13   : > { %s98_s27 = sshll.u32 %s91_s26, 4  ;;  %p466_p13 = pnand %p251_p10, %p438_p5  ;;  %s470_s27 = int_to_ptr.vmem [resolvable:$true] %s98_s27 }
  0x14   : > { %s88_s29 = scalar_lea.sflag [#allocation3], %s87_s20  ;;  %s289_s30 = scalar_lea.hbm %s462_s25, 128 }
  0x15   : > { %p290_p2 = scmp.ne.s32.totalorder %s462_s25, %s289_s30  ;;  %p291_p3 = pneg %p466_p13 }
  0x16   : > { %s294_s4 = scalar_lea.hbm %s560_s0, 256  ;;  %p295_p5 = scmp.lt.u32.totalorder %s462_s25, %s560_s0 }
  0x17   : > { %p292_p4 = pnand %p291_p3, %p290_p2  ;;  %p296_p8 = scmp.lt.u32.totalorder %s294_s4, %s289_s30 }
  0x18   : > { %p298_p9 = scmp.lt.u32.totalorder %s289_s30, %s462_s25 }
  0x19   : > { %p293_p7 = pneg %p292_p4  ;;  %p297_p10 = por %p296_p8, %p295_p5 }
  0x1b   : > { %p299_p0 = por %p298_p9, %p297_p10 }
  0x1d   : > { %p300_p1 = pnand %p299_p0, %p293_p7 }
  0x1f   : > { %303 = shalt.err (!%p300_p1)
}
  0x20   : > { %s304_s13 = scalar_lea.vmem %s470_s27, 128  ;;  %s387_s14 = smov [#allocation2]  }
  0x21   : > { %p305_p2 = scmp.ne.s32.totalorder %s470_s27, %s304_s13  ;;  %s309_s16 = sshll.u32 %s387_s14, 4  ;;  %s310_s16 = int_to_ptr.vmem [resolvable:$false] %s309_s16 }
  0x22   : > { %s311_s20 = scalar_lea.vmem %s310_s16, 256  ;;  %p312_p11 = scmp.lt.s32.totalorder %s470_s27, %s310_s16 }
  0x23   : > { %p307_p4 = pnand %p305_p2, %p291_p3  ;;  %p313_p5 = scmp.lt.s32.totalorder %s311_s20, %s304_s13 }
  0x25   : > { %p308_p12 = pneg %p307_p4  ;;  %p314_p8 = por %p313_p5, %p312_p11 }
  0x27   : > { %p315_p9 = pnand %p314_p8, %p308_p12 }
  0x29   : > { %318 = shalt.err (!%p315_p9)
}
  0x2a   : > { %246 = dma.hbm_to_vmem [thread:$0]  (!%p466_p13), %s462_s25, 128, %s470_s27, %s88_s29  }
  0x2b   : > { %p568_p0 = scmp.lt.s32.totalorder %s385_s9, 3  ;;  %p569_p1 = scmp.ge.s32.totalorder %s385_s9, 1 }
  0x2d   : > { %p104_p3 = pnand %p569_p1, %p568_p0 }
  0x2e   : > { %s504_s21 = sand.u32 (!%p104_p3), 1, %s377_s7  }
  0x2f   : > { %107 = sbr.rel (%p104_p3) target bundleno = 382 (0x17e), region = 24  ;;  %s233_s22 = sshll.u32 (!%p104_p3), %s504_s21, 3 }
  0x30   : > { %s110_s23 = scalar_lea.sflag (!%p104_p3), [#allocation3], %s504_s21  ;;  %s113_s24 = scalar_lea.vmem (!%p104_p3), [#allocation2], %s233_s22 }
  0x36   : > { %364 = dma.done.wait (%p442_p6), %s110_s23, 128  }
  0x37   : > { %366 = vsyncadd (%p442_p6), %s110_s23, 4294967168  ;;  %v132_v0 = vld [vmem:[%s113_s24] sm:$0xff]  ;;  %s236_s25 = sshll.u32 %s420_s10, 7  ;;  %s131_s26 = scalar_lea.vmem [#allocation5], %s233_s22 }
  0x38   : > { %133 = vmax.xlane.f32.xlu0 %v132_v0  ;;  %s157_s27 = sshll.u32 %s131_s26, 4  ;;  %s516_s29 = scalar_lea.hbm %s561_s1, %s236_s25  ;;  %s518_s27 = int_to_ptr.vmem [resolvable:$true] %s157_s27 }
  0x39   : > { %s144_s30 = scalar_lea.sflag [#allocation4], %s504_s21  ;;  %s319_s2 = scalar_lea.vmem %s518_s27, 128 }
  0x3a   : > { %p320_p6 = scmp.ne.s32.totalorder %s518_s27, %s319_s2  ;;  %p570_p11 = scmp.ne.s32.totalorder %s565_s18, 0 }
  0x3b   : > { %s388_s10 = smov [#allocation5]  }
  0x3c   : > { %p321_p12 = pnand %p320_p6, %p570_p11  ;;  %s323_s3 = sshll.u32 %s388_s10, 4  ;;  %s324_s3 = int_to_ptr.vmem [resolvable:$false] %s323_s3 }
  0x3d   : > { %s325_s4 = scalar_lea.vmem %s324_s3, 256  ;;  %p326_p7 = scmp.lt.s32.totalorder %s518_s27, %s324_s3 }
  0x3e   : > { %p322_p13 = pneg %p321_p12  ;;  %p327_p10 = scmp.lt.s32.totalorder %s325_s4, %s319_s2 }
  0x40   : > { %p328_p2 = por %p327_p10, %p326_p7 }
  0x42   : > { %p329_p4 = pnand %p328_p2, %p322_p13 }
  0xc5   : > { %v134_v1 = vpop.xlane.xlu0 %133 }
  0xc6   : > { %v135_v2 = vsub.f32 %v132_v0, %v134_v1 }
  0xc8   : > { %v136_v3 = vmul.f32 1.442695, %v135_v2 }
  0xca   : > { %285 = vpow2.f32 %v136_v3 }
  0xd4   : > { %v286_v4 = vpop.eup %285 }
  0xd5   : > { %138 = vadd.xlane.f32.xlu0 %v286_v4 }
 0x162   : > { %v139_v5 = vpop.xlane.xlu0 %138 }
 0x163   : > { %287 = vrcp.f32 %v139_v5 }
 0x16d   : > { %v288_v6 = vpop.eup %287 }
 0x16e   : > { %v141_v7 = vmul.f32 %v288_v6, %v286_v4 }
 0x170   : > { %142 = vst [vmem:[%s131_s26] sm:$0xff] %v141_v7 }
 0x171   : > { %332 = shalt.err (!%p329_p4)
}
 0x172   : > { %s333_s5 = scalar_lea.hbm %s516_s29, 128  ;;  %s337_s14 = scalar_lea.hbm %s561_s1, 256 }
 0x173   : > { %p334_p5 = scmp.ne.s32.totalorder %s516_s29, %s333_s5  ;;  %p338_p0 = scmp.lt.u32.totalorder %s516_s29, %s561_s1 }
 0x174   : > { %p339_p1 = scmp.lt.u32.totalorder %s337_s14, %s333_s5  ;;  %p341_p6 = scmp.lt.u32.totalorder %s333_s5, %s516_s29 }
 0x175   : > { %p335_p8 = pnand %p334_p5, %p570_p11 }
 0x176   : > { %p340_p3 = por %p339_p1, %p338_p0 }
 0x177   : > { %p336_p9 = pneg %p335_p8 }
 0x178   : > { %p342_p12 = por %p341_p6, %p340_p3 }
 0x17a   : > { %p343_p13 = pnand %p342_p12, %p336_p9 }
 0x17c   : > { %346 = shalt.err (!%p343_p13)
}
 0x17d   : > { %241 = dma.vmem_to_hbm [thread:$0]  (%p570_p11), %s518_s27, 128, %s516_s29, %s144_s30  }
 0x17e PF: > { %s169_s21 = sand.u32 1, %s373_s6   ;;  %p571_p7 = scmp.ne.s32.totalorder %s566_s19, 0 }
 0x17f   : > { %p572_p10 = scmp.ge.s32.totalorder %s385_s9, 2  ;;  %s170_s22 = scalar_lea.sflag [#allocation4], %s169_s21 }
 0x181   : > { %p248_p2 = pnand %p572_p10, %p571_p7 }
 0x183   : > { %368 = dma.done.wait (!%p248_p2), %s170_s22, 128  }
 0x184   : > { %370 = vsyncadd (!%p248_p2), %s170_s22, 4294967168  ;;  %p14_p4 = scmp.ge.s32.totalorder %s424_s12, 4   ;;  %s573_s6 = smov %s377_s7 }
 0x185   : > { %s574_s7 = smov %s381_s8  ;;  %s575_s8 = smov %s436_s15 }
 0x186   : > { %s576_s9 = smov %s424_s12  ;;  %16 = sbr.rel (!%p14_p4) target bundleno = 5 (0x5), region = 69 }
 0x18d   :  { %175 = vsyncpa [#allocation3], 1 }
 0x18e   :  { %177 = vsyncpa [#allocation3 + $0x1], 1 }
 0x18f   :  { %178 = vsyncpa [#allocation4], 1 }
 0x190   :  { %180 = vsyncpa [#allocation4 + $0x1], 1 }

</bundles_post_ra>
